<compile_context>
chip_gen: v5e
topology: v5e:2x2
jax: 0.10.0
libtpu: 0.0.40
codegen_flags: <defaults>
</compile_context>

<pallas_src>
import jax
import jax.numpy as jnp
import numpy as np
from jax.experimental import pallas as pl
from jax.experimental.pallas import tpu as pltpu


# ----------------------------------------------------------------------------
# Pallas kernel: single invocation, everything VMEM-resident.
#   refs: xp (T*Bp, 4H) f32   pre-projected inputs (emb@Wih + b, g-cols *2)
#         lens (Bp, 1)  i32   sequence lengths (padded rows = 0)
#         whh  (H, 4H)  f32   recurrent weights (g-cols *2)
#         w1 (H,H), b1 (1,H), w2 (H,128), b2 (1,128)
#   out:  (Bp, 128) f32  lane-dense head output (cols >= L are zero)
# ----------------------------------------------------------------------------
def seq_lstm_kernel(xp_ref, lens_ref, whh_ref,
                    w1_ref, b1_ref, w2_ref, b2_ref,
                    out_ref):
    Bp = lens_ref.shape[0]
    T = xp_ref.shape[0] // Bp
    H = whh_ref.shape[0]

    xp = xp_ref[...]            # (T*Bp, 4H) — 8 vregs at toy shapes, stays in vregs
    lens = lens_ref[...]        # (Bp, 1) int32, loaded once
    whh = whh_ref[...]          # (H, 4H), VMEM/vreg-resident across the loop

    h = jnp.zeros((Bp, H), jnp.float32)
    c = jnp.zeros((Bp, H), jnp.float32)

    # TODO(synk): for large T switch to a partially-unrolled fori_loop over
    # pipelined T-chunks so code size / vreg live ranges / VMEM (v7x: 64 MiB)
    # stay bounded; full static unroll + in-vreg activations is right for T=8.
    for t in range(T):
        # Only the recurrent h@Whh matmul remains inside the serial chain.
        gates = xp[t * Bp:(t + 1) * Bp, :] + jnp.dot(
            h, whh, preferred_element_type=jnp.float32)            # (Bp, 4H)

        # Single full-tile EUP pass; g-gate columns were pre-scaled by 2 so
        # tanh(g_raw) == 2*sigmoid(2*g_raw) - 1 exactly.
        sig = jax.nn.sigmoid(gates)
        i = sig[:, 0 * H:1 * H]
        f = sig[:, 1 * H:2 * H]
        g = 2.0 * sig[:, 2 * H:3 * H] - 1.0
        o = sig[:, 3 * H:4 * H]

        c_new = f * c + i * g
        h_new = o * jnp.tanh(c_new)

        # pack_padded_sequence semantics: freeze state once t >= x_lens[b].
        valid = t < lens                                           # (Bp, 1) bool
        h = jnp.where(valid, h_new, h)
        c = jnp.where(valid, c_new, c)

    # Fused head: linear1 -> tanh -> linear2 (lane-dense 128-wide store).
    z = jnp.tanh(jnp.dot(h, w1_ref[...], preferred_element_type=jnp.float32)
                 + b1_ref[...])
    out_ref[...] = (jnp.dot(z, w2_ref[...], preferred_element_type=jnp.float32)
                    + b2_ref[...]).astype(out_ref.dtype)


def seq_lstm_forward(tokens, x_lens, params):
    """tokens: [B, T] int32, x_lens: [B] int32."""
    emb_table = params["embedding"]
    B, T = tokens.shape
    H = params["Whh"].shape[0]
    L = params["W2"].shape[1]
    LANES = 128

    # Pad batch to the 8-sublane granule; padded rows get length 0 (state stays 0).
    Bp = ((B + 7) // 8) * 8
    pad = Bp - B
    tokens_p = jnp.pad(tokens, ((0, pad), (0, 0)))                 # pad token id 0
    lens_p = jnp.pad(x_lens.astype(jnp.int32), (0, pad))           # (Bp,)
    lens2d = lens_p[:, None]                                       # (Bp, 1)

    # g-gate (tanh) columns pre-scaled by 2 so the kernel needs only one
    # full-tile sigmoid per step (tanh(x) = 2*sigmoid(2x) - 1, exact).
    gate_scale = jnp.concatenate(
        [jnp.ones((1, H), jnp.float32), jnp.ones((1, H), jnp.float32),
         2.0 * jnp.ones((1, H), jnp.float32), jnp.ones((1, H), jnp.float32)],
        axis=1)                                                    # (1, 4H)

    # Fold the input projection into the embedding table (P = emb @ Wih + b) and
    # gather rows time-major.  The gather is over a tiny table -> free in XLA.
    # TODO(synk): embedding gather stays in plain XLA (glue); a Pallas DMA-gather
    # is overkill at this vocab size.
    proj_table = (emb_table @ params["Wih"] + params["b"]) * gate_scale  # (V, 4H)
    xp = proj_table[tokens_p.T].reshape(T * Bp, 4 * H)             # (T*Bp, 4H)
    whh_s = params["Whh"] * gate_scale                             # (H, 4H)

    # Lane-dense head output: zero-pad W2/b2 to 128 columns, slice after the call.
    w2p = jnp.pad(params["W2"], ((0, 0), (0, LANES - L)))
    b2p = jnp.pad(params["b2"], ((0, 0), (0, LANES - L)))

    ce = pl.CostEstimate(
        flops=2 * T * Bp * H * 4 * H + 2 * Bp * H * H + 2 * Bp * H * LANES,
        transcendentals=T * Bp * 5 * H + Bp * H,
        bytes_accessed=4 * (T * Bp * 4 * H + H * 4 * H + H * H
                            + H * LANES + Bp * LANES),
    )

    vmem_spec = pl.BlockSpec(memory_space=pltpu.MemorySpace.VMEM)
    out = pl.pallas_call(
        seq_lstm_kernel,
        out_shape=jax.ShapeDtypeStruct((Bp, LANES), jnp.float32),
        in_specs=[vmem_spec] * 7,
        out_specs=vmem_spec,
        cost_estimate=ce,
    )(xp, lens2d, whh_s,
      params["W1"], params["b1"], w2p, b2p)
    return out[:B, :L]


# ----------------------------------------------------------------------------
# Pure-JAX reference (correctness check only).
# ----------------------------------------------------------------------------
def ref_forward(tokens, x_lens, p):
    emb = p["embedding"][tokens]
    B, T, E = emb.shape
    H = p["Whh"].shape[0]
    h = jnp.zeros((B, H), jnp.float32)
    c = jnp.zeros((B, H), jnp.float32)
    for t in range(T):
        x_t = emb[:, t, :]
        gates = x_t @ p["Wih"] + h @ p["Whh"] + p["b"]
        i = jax.nn.sigmoid(gates[:, :H])
        f = jax.nn.sigmoid(gates[:, H:2 * H])
        g = jnp.tanh(gates[:, 2 * H:3 * H])
        o = jax.nn.sigmoid(gates[:, 3 * H:])
        c_new = f * c + i * g
        h_new = o * jnp.tanh(c_new)
        m = (t < x_lens).astype(jnp.float32)[:, None]
        c = m * c_new + (1.0 - m) * c
        h = m * h_new + (1.0 - m) * h
    z = jnp.tanh(h @ p["W1"] + p["b1"])
    return z @ p["W2"] + p["b2"]


# ----------------------------------------------------------------------------
# Deterministic parameter init (synthetic; mirrors the module's shapes).
# ----------------------------------------------------------------------------
def init_params(key, vocab_size, num_labels, E, H):
    ks = jax.random.split(key, 9)
    s = 1.0 / np.sqrt(H)
    emb = 0.1 * jax.random.normal(ks[0], (vocab_size, E), jnp.float32)
    emb = emb.at[0].set(0.0)  # padding_idx=0
    return {
        "embedding": emb,
        # LSTM weights stored transposed for x @ W; gate order [i, f, g, o].
        "Wih": jax.random.uniform(ks[1], (E, 4 * H), jnp.float32, -s, s),
        "Whh": jax.random.uniform(ks[2], (H, 4 * H), jnp.float32, -s, s),
        "b": jax.random.uniform(ks[3], (1, 4 * H), jnp.float32, -s, s)
             + jax.random.uniform(ks[4], (1, 4 * H), jnp.float32, -s, s),
        "W1": jax.random.uniform(ks[5], (H, H), jnp.float32, -s, s),
        "b1": jax.random.uniform(ks[6], (1, H), jnp.float32, -s, s),
        "W2": jax.random.uniform(ks[7], (H, num_labels), jnp.float32, -s, s),
        "b2": jax.random.uniform(ks[8], (1, num_labels), jnp.float32, -s, s),
    }


if __name__ == "__main__":
    VOCAB, LABELS, E, H = 20, 5, 16, 32
    B, T = 4, 8

    key = jax.random.PRNGKey(0)
    kp, kt = jax.random.split(key)
    params = init_params(kp, VOCAB, LABELS, E, H)

    tokens = jax.random.randint(kt, (B, T), 1, VOCAB, dtype=jnp.int32)
    x_lens = jnp.array([8, 5, 3, 6], dtype=jnp.int32)
    # zero out padded positions (padding token id = 0), as a dataloader would.
    tokens = jnp.where(jnp.arange(T)[None, :] < x_lens[:, None], tokens, 0)

    out = jax.block_until_ready(seq_lstm_forward(tokens, x_lens, params))
    ref = jax.block_until_ready(ref_forward(tokens, x_lens, params))
    np.testing.assert_allclose(np.asarray(out), np.asarray(ref),
                               rtol=1e-5, atol=1e-5)

    print("KERNEL_OK")
</pallas_src>

<mosaic_0001>
module attributes {stable_mosaic.version = 11 : i64} {
  func.func @seq_lstm_kernel(%arg0: memref<64x128xf32, #tpu.memory_space<vmem>>, %arg1: memref<8x1xi32, #tpu.memory_space<vmem>>, %arg2: memref<32x128xf32, #tpu.memory_space<vmem>>, %arg3: memref<32x32xf32, #tpu.memory_space<vmem>>, %arg4: memref<1x32xf32, #tpu.memory_space<vmem>>, %arg5: memref<32x128xf32, #tpu.memory_space<vmem>>, %arg6: memref<1x128xf32, #tpu.memory_space<vmem>>, %arg7: memref<8x128xf32, #tpu.memory_space<vmem>>) attributes {dimension_semantics = [], scalar_prefetch = 0 : i64, scratch_operands = 0 : i64, tpu.core_type = #tpu.core_type<tc>} {
    %c0 = arith.constant 0 : index
    %c0_0 = arith.constant 0 : index
    %0 = vector.load %arg0[%c0, %c0_0] : memref<64x128xf32, #tpu.memory_space<vmem>>, vector<64x128xf32>
    %c0_1 = arith.constant 0 : index
    %c0_2 = arith.constant 0 : index
    %1 = vector.load %arg1[%c0_1, %c0_2] : memref<8x1xi32, #tpu.memory_space<vmem>>, vector<8x1xi32>
    %c0_3 = arith.constant 0 : index
    %c0_4 = arith.constant 0 : index
    %2 = vector.load %arg2[%c0_3, %c0_4] : memref<32x128xf32, #tpu.memory_space<vmem>>, vector<32x128xf32>
    %cst = arith.constant 0.000000e+00 : f32
    %3 = vector.broadcast %cst : f32 to vector<8x32xf32>
    %cst_5 = arith.constant 0.000000e+00 : f32
    %4 = vector.broadcast %cst_5 : f32 to vector<8x32xf32>
    %5 = vector.extract_strided_slice %0 {offsets = [0, 0], sizes = [8, 128], strides = [1, 1]} : vector<64x128xf32> to vector<8x128xf32>
    %cst_6 = arith.constant dense<0.000000e+00> : vector<8x128xf32>
    %6 = tpu.matmul %3, %2, %cst_6 {dimension_numbers = #tpu.dot_dimension_numbers<[1], [0], [0], [1], [0, 0, 1, 1], [], []>} : vector<8x32xf32>, vector<32x128xf32>, vector<8x128xf32> -> vector<8x128xf32>
    %7 = arith.addf %5, %6 : vector<8x128xf32>
    %8 = arith.negf %7 : vector<8x128xf32>
    %9 = math.exp %8 : vector<8x128xf32>
    %cst_7 = arith.constant 1.000000e+00 : f32
    %10 = vector.broadcast %cst_7 : f32 to vector<8x128xf32>
    %11 = arith.addf %10, %9 : vector<8x128xf32>
    %12 = arith.divf %10, %11 : vector<8x128xf32>
    %13 = vector.extract_strided_slice %12 {offsets = [0, 0], sizes = [8, 32], strides = [1, 1]} : vector<8x128xf32> to vector<8x32xf32>
    %14 = vector.extract_strided_slice %12 {offsets = [0, 32], sizes = [8, 32], strides = [1, 1]} : vector<8x128xf32> to vector<8x32xf32>
    %15 = vector.extract_strided_slice %12 {offsets = [0, 64], sizes = [8, 32], strides = [1, 1]} : vector<8x128xf32> to vector<8x32xf32>
    %cst_8 = arith.constant 2.000000e+00 : f32
    %16 = vector.broadcast %cst_8 : f32 to vector<8x32xf32>
    %17 = arith.mulf %16, %15 : vector<8x32xf32>
    %cst_9 = arith.constant 1.000000e+00 : f32
    %18 = vector.broadcast %cst_9 : f32 to vector<8x32xf32>
    %19 = arith.subf %17, %18 : vector<8x32xf32>
    %20 = vector.extract_strided_slice %12 {offsets = [0, 96], sizes = [8, 32], strides = [1, 1]} : vector<8x128xf32> to vector<8x32xf32>
    %21 = arith.mulf %14, %4 : vector<8x32xf32>
    %22 = arith.mulf %13, %19 : vector<8x32xf32>
    %23 = arith.addf %21, %22 : vector<8x32xf32>
    %24 = math.tanh %23 : vector<8x32xf32>
    %25 = arith.mulf %20, %24 : vector<8x32xf32>
    %c0_i32 = arith.constant 0 : i32
    %26 = vector.broadcast %c0_i32 : i32 to vector<8x1xi32>
    %27 = arith.cmpi sgt, %1, %26 : vector<8x1xi32>
    %28 = vector.shape_cast %27 : vector<8x1xi1> to vector<8x1xi1>
    %29 = vector.broadcast %28 : vector<8x1xi1> to vector<8x32xi1>
    %30 = arith.select %29, %25, %3 : vector<8x32xi1>, vector<8x32xf32>
    %31 = vector.shape_cast %27 : vector<8x1xi1> to vector<8x1xi1>
    %32 = vector.broadcast %31 : vector<8x1xi1> to vector<8x32xi1>
    %33 = arith.select %32, %23, %4 : vector<8x32xi1>, vector<8x32xf32>
    %34 = vector.extract_strided_slice %0 {offsets = [8, 0], sizes = [8, 128], strides = [1, 1]} : vector<64x128xf32> to vector<8x128xf32>
    %cst_10 = arith.constant dense<0.000000e+00> : vector<8x128xf32>
    %35 = tpu.matmul %30, %2, %cst_10 {dimension_numbers = #tpu.dot_dimension_numbers<[1], [0], [0], [1], [0, 0, 1, 1], [], []>} : vector<8x32xf32>, vector<32x128xf32>, vector<8x128xf32> -> vector<8x128xf32>
    %36 = arith.addf %34, %35 : vector<8x128xf32>
    %37 = arith.negf %36 : vector<8x128xf32>
    %38 = math.exp %37 : vector<8x128xf32>
    %cst_11 = arith.constant 1.000000e+00 : f32
    %39 = vector.broadcast %cst_11 : f32 to vector<8x128xf32>
    %40 = arith.addf %39, %38 : vector<8x128xf32>
    %41 = arith.divf %39, %40 : vector<8x128xf32>
    %42 = vector.extract_strided_slice %41 {offsets = [0, 0], sizes = [8, 32], strides = [1, 1]} : vector<8x128xf32> to vector<8x32xf32>
    %43 = vector.extract_strided_slice %41 {offsets = [0, 32], sizes = [8, 32], strides = [1, 1]} : vector<8x128xf32> to vector<8x32xf32>
    %44 = vector.extract_strided_slice %41 {offsets = [0, 64], sizes = [8, 32], strides = [1, 1]} : vector<8x128xf32> to vector<8x32xf32>
    %cst_12 = arith.constant 2.000000e+00 : f32
    %45 = vector.broadcast %cst_12 : f32 to vector<8x32xf32>
    %46 = arith.mulf %45, %44 : vector<8x32xf32>
    %cst_13 = arith.constant 1.000000e+00 : f32
    %47 = vector.broadcast %cst_13 : f32 to vector<8x32xf32>
    %48 = arith.subf %46, %47 : vector<8x32xf32>
    %49 = vector.extract_strided_slice %41 {offsets = [0, 96], sizes = [8, 32], strides = [1, 1]} : vector<8x128xf32> to vector<8x32xf32>
    %50 = arith.mulf %43, %33 : vector<8x32xf32>
    %51 = arith.mulf %42, %48 : vector<8x32xf32>
    %52 = arith.addf %50, %51 : vector<8x32xf32>
    %53 = math.tanh %52 : vector<8x32xf32>
    %54 = arith.mulf %49, %53 : vector<8x32xf32>
    %c1_i32 = arith.constant 1 : i32
    %55 = vector.broadcast %c1_i32 : i32 to vector<8x1xi32>
    %56 = arith.cmpi sgt, %1, %55 : vector<8x1xi32>
    %57 = vector.shape_cast %56 : vector<8x1xi1> to vector<8x1xi1>
    %58 = vector.broadcast %57 : vector<8x1xi1> to vector<8x32xi1>
    %59 = arith.select %58, %54, %30 : vector<8x32xi1>, vector<8x32xf32>
    %60 = vector.shape_cast %56 : vector<8x1xi1> to vector<8x1xi1>
    %61 = vector.broadcast %60 : vector<8x1xi1> to vector<8x32xi1>
    %62 = arith.select %61, %52, %33 : vector<8x32xi1>, vector<8x32xf32>
    %63 = vector.extract_strided_slice %0 {offsets = [16, 0], sizes = [8, 128], strides = [1, 1]} : vector<64x128xf32> to vector<8x128xf32>
    %cst_14 = arith.constant dense<0.000000e+00> : vector<8x128xf32>
    %64 = tpu.matmul %59, %2, %cst_14 {dimension_numbers = #tpu.dot_dimension_numbers<[1], [0], [0], [1], [0, 0, 1, 1], [], []>} : vector<8x32xf32>, vector<32x128xf32>, vector<8x128xf32> -> vector<8x128xf32>
    %65 = arith.addf %63, %64 : vector<8x128xf32>
    %66 = arith.negf %65 : vector<8x128xf32>
    %67 = math.exp %66 : vector<8x128xf32>
    %cst_15 = arith.constant 1.000000e+00 : f32
    %68 = vector.broadcast %cst_15 : f32 to vector<8x128xf32>
    %69 = arith.addf %68, %67 : vector<8x128xf32>
    %70 = arith.divf %68, %69 : vector<8x128xf32>
    %71 = vector.extract_strided_slice %70 {offsets = [0, 0], sizes = [8, 32], strides = [1, 1]} : vector<8x128xf32> to vector<8x32xf32>
    %72 = vector.extract_strided_slice %70 {offsets = [0, 32], sizes = [8, 32], strides = [1, 1]} : vector<8x128xf32> to vector<8x32xf32>
    %73 = vector.extract_strided_slice %70 {offsets = [0, 64], sizes = [8, 32], strides = [1, 1]} : vector<8x128xf32> to vector<8x32xf32>
    %cst_16 = arith.constant 2.000000e+00 : f32
    %74 = vector.broadcast %cst_16 : f32 to vector<8x32xf32>
    %75 = arith.mulf %74, %73 : vector<8x32xf32>
    %cst_17 = arith.constant 1.000000e+00 : f32
    %76 = vector.broadcast %cst_17 : f32 to vector<8x32xf32>
    %77 = arith.subf %75, %76 : vector<8x32xf32>
    %78 = vector.extract_strided_slice %70 {offsets = [0, 96], sizes = [8, 32], strides = [1, 1]} : vector<8x128xf32> to vector<8x32xf32>
    %79 = arith.mulf %72, %62 : vector<8x32xf32>
    %80 = arith.mulf %71, %77 : vector<8x32xf32>
    %81 = arith.addf %79, %80 : vector<8x32xf32>
    %82 = math.tanh %81 : vector<8x32xf32>
    %83 = arith.mulf %78, %82 : vector<8x32xf32>
    %c2_i32 = arith.constant 2 : i32
    %84 = vector.broadcast %c2_i32 : i32 to vector<8x1xi32>
    %85 = arith.cmpi sgt, %1, %84 : vector<8x1xi32>
    %86 = vector.shape_cast %85 : vector<8x1xi1> to vector<8x1xi1>
    %87 = vector.broadcast %86 : vector<8x1xi1> to vector<8x32xi1>
    %88 = arith.select %87, %83, %59 : vector<8x32xi1>, vector<8x32xf32>
    %89 = vector.shape_cast %85 : vector<8x1xi1> to vector<8x1xi1>
    %90 = vector.broadcast %89 : vector<8x1xi1> to vector<8x32xi1>
    %91 = arith.select %90, %81, %62 : vector<8x32xi1>, vector<8x32xf32>
    %92 = vector.extract_strided_slice %0 {offsets = [24, 0], sizes = [8, 128], strides = [1, 1]} : vector<64x128xf32> to vector<8x128xf32>
    %cst_18 = arith.constant dense<0.000000e+00> : vector<8x128xf32>
    %93 = tpu.matmul %88, %2, %cst_18 {dimension_numbers = #tpu.dot_dimension_numbers<[1], [0], [0], [1], [0, 0, 1, 1], [], []>} : vector<8x32xf32>, vector<32x128xf32>, vector<8x128xf32> -> vector<8x128xf32>
    %94 = arith.addf %92, %93 : vector<8x128xf32>
    %95 = arith.negf %94 : vector<8x128xf32>
    %96 = math.exp %95 : vector<8x128xf32>
    %cst_19 = arith.constant 1.000000e+00 : f32
    %97 = vector.broadcast %cst_19 : f32 to vector<8x128xf32>
    %98 = arith.addf %97, %96 : vector<8x128xf32>
    %99 = arith.divf %97, %98 : vector<8x128xf32>
    %100 = vector.extract_strided_slice %99 {offsets = [0, 0], sizes = [8, 32], strides = [1, 1]} : vector<8x128xf32> to vector<8x32xf32>
    %101 = vector.extract_strided_slice %99 {offsets = [0, 32], sizes = [8, 32], strides = [1, 1]} : vector<8x128xf32> to vector<8x32xf32>
    %102 = vector.extract_strided_slice %99 {offsets = [0, 64], sizes = [8, 32], strides = [1, 1]} : vector<8x128xf32> to vector<8x32xf32>
    %cst_20 = arith.constant 2.000000e+00 : f32
    %103 = vector.broadcast %cst_20 : f32 to vector<8x32xf32>
    %104 = arith.mulf %103, %102 : vector<8x32xf32>
    %cst_21 = arith.constant 1.000000e+00 : f32
    %105 = vector.broadcast %cst_21 : f32 to vector<8x32xf32>
    %106 = arith.subf %104, %105 : vector<8x32xf32>
    %107 = vector.extract_strided_slice %99 {offsets = [0, 96], sizes = [8, 32], strides = [1, 1]} : vector<8x128xf32> to vector<8x32xf32>
    %108 = arith.mulf %101, %91 : vector<8x32xf32>
    %109 = arith.mulf %100, %106 : vector<8x32xf32>
    %110 = arith.addf %108, %109 : vector<8x32xf32>
    %111 = math.tanh %110 : vector<8x32xf32>
    %112 = arith.mulf %107, %111 : vector<8x32xf32>
    %c3_i32 = arith.constant 3 : i32
    %113 = vector.broadcast %c3_i32 : i32 to vector<8x1xi32>
    %114 = arith.cmpi sgt, %1, %113 : vector<8x1xi32>
    %115 = vector.shape_cast %114 : vector<8x1xi1> to vector<8x1xi1>
    %116 = vector.broadcast %115 : vector<8x1xi1> to vector<8x32xi1>
    %117 = arith.select %116, %112, %88 : vector<8x32xi1>, vector<8x32xf32>
    %118 = vector.shape_cast %114 : vector<8x1xi1> to vector<8x1xi1>
    %119 = vector.broadcast %118 : vector<8x1xi1> to vector<8x32xi1>
    %120 = arith.select %119, %110, %91 : vector<8x32xi1>, vector<8x32xf32>
    %121 = vector.extract_strided_slice %0 {offsets = [32, 0], sizes = [8, 128], strides = [1, 1]} : vector<64x128xf32> to vector<8x128xf32>
    %cst_22 = arith.constant dense<0.000000e+00> : vector<8x128xf32>
    %122 = tpu.matmul %117, %2, %cst_22 {dimension_numbers = #tpu.dot_dimension_numbers<[1], [0], [0], [1], [0, 0, 1, 1], [], []>} : vector<8x32xf32>, vector<32x128xf32>, vector<8x128xf32> -> vector<8x128xf32>
    %123 = arith.addf %121, %122 : vector<8x128xf32>
    %124 = arith.negf %123 : vector<8x128xf32>
    %125 = math.exp %124 : vector<8x128xf32>
    %cst_23 = arith.constant 1.000000e+00 : f32
    %126 = vector.broadcast %cst_23 : f32 to vector<8x128xf32>
    %127 = arith.addf %126, %125 : vector<8x128xf32>
    %128 = arith.divf %126, %127 : vector<8x128xf32>
    %129 = vector.extract_strided_slice %128 {offsets = [0, 0], sizes = [8, 32], strides = [1, 1]} : vector<8x128xf32> to vector<8x32xf32>
    %130 = vector.extract_strided_slice %128 {offsets = [0, 32], sizes = [8, 32], strides = [1, 1]} : vector<8x128xf32> to vector<8x32xf32>
    %131 = vector.extract_strided_slice %128 {offsets = [0, 64], sizes = [8, 32], strides = [1, 1]} : vector<8x128xf32> to vector<8x32xf32>
    %cst_24 = arith.constant 2.000000e+00 : f32
    %132 = vector.broadcast %cst_24 : f32 to vector<8x32xf32>
    %133 = arith.mulf %132, %131 : vector<8x32xf32>
    %cst_25 = arith.constant 1.000000e+00 : f32
    %134 = vector.broadcast %cst_25 : f32 to vector<8x32xf32>
    %135 = arith.subf %133, %134 : vector<8x32xf32>
    %136 = vector.extract_strided_slice %128 {offsets = [0, 96], sizes = [8, 32], strides = [1, 1]} : vector<8x128xf32> to vector<8x32xf32>
    %137 = arith.mulf %130, %120 : vector<8x32xf32>
    %138 = arith.mulf %129, %135 : vector<8x32xf32>
    %139 = arith.addf %137, %138 : vector<8x32xf32>
    %140 = math.tanh %139 : vector<8x32xf32>
    %141 = arith.mulf %136, %140 : vector<8x32xf32>
    %c4_i32 = arith.constant 4 : i32
    %142 = vector.broadcast %c4_i32 : i32 to vector<8x1xi32>
    %143 = arith.cmpi sgt, %1, %142 : vector<8x1xi32>
    %144 = vector.shape_cast %143 : vector<8x1xi1> to vector<8x1xi1>
    %145 = vector.broadcast %144 : vector<8x1xi1> to vector<8x32xi1>
    %146 = arith.select %145, %141, %117 : vector<8x32xi1>, vector<8x32xf32>
    %147 = vector.shape_cast %143 : vector<8x1xi1> to vector<8x1xi1>
    %148 = vector.broadcast %147 : vector<8x1xi1> to vector<8x32xi1>
    %149 = arith.select %148, %139, %120 : vector<8x32xi1>, vector<8x32xf32>
    %150 = vector.extract_strided_slice %0 {offsets = [40, 0], sizes = [8, 128], strides = [1, 1]} : vector<64x128xf32> to vector<8x128xf32>
    %cst_26 = arith.constant dense<0.000000e+00> : vector<8x128xf32>
    %151 = tpu.matmul %146, %2, %cst_26 {dimension_numbers = #tpu.dot_dimension_numbers<[1], [0], [0], [1], [0, 0, 1, 1], [], []>} : vector<8x32xf32>, vector<32x128xf32>, vector<8x128xf32> -> vector<8x128xf32>
    %152 = arith.addf %150, %151 : vector<8x128xf32>
    %153 = arith.negf %152 : vector<8x128xf32>
    %154 = math.exp %153 : vector<8x128xf32>
    %cst_27 = arith.constant 1.000000e+00 : f32
    %155 = vector.broadcast %cst_27 : f32 to vector<8x128xf32>
    %156 = arith.addf %155, %154 : vector<8x128xf32>
    %157 = arith.divf %155, %156 : vector<8x128xf32>
    %158 = vector.extract_strided_slice %157 {offsets = [0, 0], sizes = [8, 32], strides = [1, 1]} : vector<8x128xf32> to vector<8x32xf32>
    %159 = vector.extract_strided_slice %157 {offsets = [0, 32], sizes = [8, 32], strides = [1, 1]} : vector<8x128xf32> to vector<8x32xf32>
    %160 = vector.extract_strided_slice %157 {offsets = [0, 64], sizes = [8, 32], strides = [1, 1]} : vector<8x128xf32> to vector<8x32xf32>
    %cst_28 = arith.constant 2.000000e+00 : f32
    %161 = vector.broadcast %cst_28 : f32 to vector<8x32xf32>
    %162 = arith.mulf %161, %160 : vector<8x32xf32>
    %cst_29 = arith.constant 1.000000e+00 : f32
    %163 = vector.broadcast %cst_29 : f32 to vector<8x32xf32>
    %164 = arith.subf %162, %163 : vector<8x32xf32>
    %165 = vector.extract_strided_slice %157 {offsets = [0, 96], sizes = [8, 32], strides = [1, 1]} : vector<8x128xf32> to vector<8x32xf32>
    %166 = arith.mulf %159, %149 : vector<8x32xf32>
    %167 = arith.mulf %158, %164 : vector<8x32xf32>
    %168 = arith.addf %166, %167 : vector<8x32xf32>
    %169 = math.tanh %168 : vector<8x32xf32>
    %170 = arith.mulf %165, %169 : vector<8x32xf32>
    %c5_i32 = arith.constant 5 : i32
    %171 = vector.broadcast %c5_i32 : i32 to vector<8x1xi32>
    %172 = arith.cmpi sgt, %1, %171 : vector<8x1xi32>
    %173 = vector.shape_cast %172 : vector<8x1xi1> to vector<8x1xi1>
    %174 = vector.broadcast %173 : vector<8x1xi1> to vector<8x32xi1>
    %175 = arith.select %174, %170, %146 : vector<8x32xi1>, vector<8x32xf32>
    %176 = vector.shape_cast %172 : vector<8x1xi1> to vector<8x1xi1>
    %177 = vector.broadcast %176 : vector<8x1xi1> to vector<8x32xi1>
    %178 = arith.select %177, %168, %149 : vector<8x32xi1>, vector<8x32xf32>
    %179 = vector.extract_strided_slice %0 {offsets = [48, 0], sizes = [8, 128], strides = [1, 1]} : vector<64x128xf32> to vector<8x128xf32>
    %cst_30 = arith.constant dense<0.000000e+00> : vector<8x128xf32>
    %180 = tpu.matmul %175, %2, %cst_30 {dimension_numbers = #tpu.dot_dimension_numbers<[1], [0], [0], [1], [0, 0, 1, 1], [], []>} : vector<8x32xf32>, vector<32x128xf32>, vector<8x128xf32> -> vector<8x128xf32>
    %181 = arith.addf %179, %180 : vector<8x128xf32>
    %182 = arith.negf %181 : vector<8x128xf32>
    %183 = math.exp %182 : vector<8x128xf32>
    %cst_31 = arith.constant 1.000000e+00 : f32
    %184 = vector.broadcast %cst_31 : f32 to vector<8x128xf32>
    %185 = arith.addf %184, %183 : vector<8x128xf32>
    %186 = arith.divf %184, %185 : vector<8x128xf32>
    %187 = vector.extract_strided_slice %186 {offsets = [0, 0], sizes = [8, 32], strides = [1, 1]} : vector<8x128xf32> to vector<8x32xf32>
    %188 = vector.extract_strided_slice %186 {offsets = [0, 32], sizes = [8, 32], strides = [1, 1]} : vector<8x128xf32> to vector<8x32xf32>
    %189 = vector.extract_strided_slice %186 {offsets = [0, 64], sizes = [8, 32], strides = [1, 1]} : vector<8x128xf32> to vector<8x32xf32>
    %cst_32 = arith.constant 2.000000e+00 : f32
    %190 = vector.broadcast %cst_32 : f32 to vector<8x32xf32>
    %191 = arith.mulf %190, %189 : vector<8x32xf32>
    %cst_33 = arith.constant 1.000000e+00 : f32
    %192 = vector.broadcast %cst_33 : f32 to vector<8x32xf32>
    %193 = arith.subf %191, %192 : vector<8x32xf32>
    %194 = vector.extract_strided_slice %186 {offsets = [0, 96], sizes = [8, 32], strides = [1, 1]} : vector<8x128xf32> to vector<8x32xf32>
    %195 = arith.mulf %188, %178 : vector<8x32xf32>
    %196 = arith.mulf %187, %193 : vector<8x32xf32>
    %197 = arith.addf %195, %196 : vector<8x32xf32>
    %198 = math.tanh %197 : vector<8x32xf32>
    %199 = arith.mulf %194, %198 : vector<8x32xf32>
    %c6_i32 = arith.constant 6 : i32
    %200 = vector.broadcast %c6_i32 : i32 to vector<8x1xi32>
    %201 = arith.cmpi sgt, %1, %200 : vector<8x1xi32>
    %202 = vector.shape_cast %201 : vector<8x1xi1> to vector<8x1xi1>
    %203 = vector.broadcast %202 : vector<8x1xi1> to vector<8x32xi1>
    %204 = arith.select %203, %199, %175 : vector<8x32xi1>, vector<8x32xf32>
    %205 = vector.shape_cast %201 : vector<8x1xi1> to vector<8x1xi1>
    %206 = vector.broadcast %205 : vector<8x1xi1> to vector<8x32xi1>
    %207 = arith.select %206, %197, %178 : vector<8x32xi1>, vector<8x32xf32>
    %208 = vector.extract_strided_slice %0 {offsets = [56, 0], sizes = [8, 128], strides = [1, 1]} : vector<64x128xf32> to vector<8x128xf32>
    %cst_34 = arith.constant dense<0.000000e+00> : vector<8x128xf32>
    %209 = tpu.matmul %204, %2, %cst_34 {dimension_numbers = #tpu.dot_dimension_numbers<[1], [0], [0], [1], [0, 0, 1, 1], [], []>} : vector<8x32xf32>, vector<32x128xf32>, vector<8x128xf32> -> vector<8x128xf32>
    %210 = arith.addf %208, %209 : vector<8x128xf32>
    %211 = arith.negf %210 : vector<8x128xf32>
    %212 = math.exp %211 : vector<8x128xf32>
    %cst_35 = arith.constant 1.000000e+00 : f32
    %213 = vector.broadcast %cst_35 : f32 to vector<8x128xf32>
    %214 = arith.addf %213, %212 : vector<8x128xf32>
    %215 = arith.divf %213, %214 : vector<8x128xf32>
    %216 = vector.extract_strided_slice %215 {offsets = [0, 0], sizes = [8, 32], strides = [1, 1]} : vector<8x128xf32> to vector<8x32xf32>
    %217 = vector.extract_strided_slice %215 {offsets = [0, 32], sizes = [8, 32], strides = [1, 1]} : vector<8x128xf32> to vector<8x32xf32>
    %218 = vector.extract_strided_slice %215 {offsets = [0, 64], sizes = [8, 32], strides = [1, 1]} : vector<8x128xf32> to vector<8x32xf32>
    %cst_36 = arith.constant 2.000000e+00 : f32
    %219 = vector.broadcast %cst_36 : f32 to vector<8x32xf32>
    %220 = arith.mulf %219, %218 : vector<8x32xf32>
    %cst_37 = arith.constant 1.000000e+00 : f32
    %221 = vector.broadcast %cst_37 : f32 to vector<8x32xf32>
    %222 = arith.subf %220, %221 : vector<8x32xf32>
    %223 = vector.extract_strided_slice %215 {offsets = [0, 96], sizes = [8, 32], strides = [1, 1]} : vector<8x128xf32> to vector<8x32xf32>
    %224 = arith.mulf %217, %207 : vector<8x32xf32>
    %225 = arith.mulf %216, %222 : vector<8x32xf32>
    %226 = arith.addf %224, %225 : vector<8x32xf32>
    %227 = math.tanh %226 : vector<8x32xf32>
    %228 = arith.mulf %223, %227 : vector<8x32xf32>
    %c7_i32 = arith.constant 7 : i32
    %229 = vector.broadcast %c7_i32 : i32 to vector<8x1xi32>
    %230 = arith.cmpi sgt, %1, %229 : vector<8x1xi32>
    %231 = vector.shape_cast %230 : vector<8x1xi1> to vector<8x1xi1>
    %232 = vector.broadcast %231 : vector<8x1xi1> to vector<8x32xi1>
    %233 = arith.select %232, %228, %204 : vector<8x32xi1>, vector<8x32xf32>
    %c0_38 = arith.constant 0 : index
    %c0_39 = arith.constant 0 : index
    %234 = vector.load %arg3[%c0_38, %c0_39] : memref<32x32xf32, #tpu.memory_space<vmem>>, vector<32x32xf32>
    %cst_40 = arith.constant dense<0.000000e+00> : vector<8x32xf32>
    %235 = tpu.matmul %233, %234, %cst_40 {dimension_numbers = #tpu.dot_dimension_numbers<[1], [0], [0], [1], [0, 0, 1, 1], [], []>} : vector<8x32xf32>, vector<32x32xf32>, vector<8x32xf32> -> vector<8x32xf32>
    %c0_41 = arith.constant 0 : index
    %c0_42 = arith.constant 0 : index
    %236 = vector.load %arg4[%c0_41, %c0_42] : memref<1x32xf32, #tpu.memory_space<vmem>>, vector<1x32xf32>
    %237 = vector.broadcast %236 : vector<1x32xf32> to vector<8x32xf32>
    %238 = arith.addf %235, %237 : vector<8x32xf32>
    %239 = math.tanh %238 : vector<8x32xf32>
    %c0_43 = arith.constant 0 : index
    %c0_44 = arith.constant 0 : index
    %240 = vector.load %arg5[%c0_43, %c0_44] : memref<32x128xf32, #tpu.memory_space<vmem>>, vector<32x128xf32>
    %cst_45 = arith.constant dense<0.000000e+00> : vector<8x128xf32>
    %241 = tpu.matmul %239, %240, %cst_45 {dimension_numbers = #tpu.dot_dimension_numbers<[1], [0], [0], [1], [0, 0, 1, 1], [], []>} : vector<8x32xf32>, vector<32x128xf32>, vector<8x128xf32> -> vector<8x128xf32>
    %c0_46 = arith.constant 0 : index
    %c0_47 = arith.constant 0 : index
    %242 = vector.load %arg6[%c0_46, %c0_47] : memref<1x128xf32, #tpu.memory_space<vmem>>, vector<1x128xf32>
    %243 = vector.broadcast %242 : vector<1x128xf32> to vector<8x128xf32>
    %244 = arith.addf %241, %243 : vector<8x128xf32>
    %c0_48 = arith.constant 0 : index
    %c0_49 = arith.constant 0 : index
    %245 = vector.load %arg7[%c0_48, %c0_49] : memref<8x128xf32, #tpu.memory_space<vmem>>, vector<8x128xf32>
    tpu.vector_store %arg7[%c0_48, %c0_49], %244 {strides = array<i32>} : memref<8x128xf32, #tpu.memory_space<vmem>>, vector<8x128xf32>,
    return
  }
}

</mosaic_0001>

<bundles_post_ra>
// kernel: tpu_custom_call.1
= control target key start
LH: loop header
LB: loop body
LE: loop exit
PB: predicated region body
PF: predicated region fallthrough
CT: control target
= control target key end

     0   :  { %12 = vsyncpa [#allocation3], 0  ;;  %s1132_s0 = inlined_call_operand.hbm [shape: f32[64,128], index: 0, kind: input, shape index: {}]   ;;  %s1133_s1 = inlined_call_operand.vmem [shape: s32[8,1], index: 1, kind: input, shape index: {}]   ;;  %s1134_s2 = inlined_call_operand.hbm [shape: f32[32,128], index: 2, kind: input, shape index: {}]   ;;  %s1135_s3 = inlined_call_operand.hbm [shape: f32[32,32], index: 3, kind: input, shape index: {}]   ;;  %s1136_s4 = inlined_call_operand.vmem [shape: f32[1,32], index: 4, kind: input, shape index: {}]   ;;  %s1137_s5 = inlined_call_operand.hbm [shape: f32[32,128], index: 5, kind: input, shape index: {}]   ;;  %s1138_s6 = inlined_call_operand.vmem [shape: f32[1,128], index: 6, kind: input, shape index: {}]   ;;  %s1139_s7 = inlined_call_operand.hbm [shape: f32[8,128], index: 7, kind: output, shape index: {}]  }
   0x1   :  { %13 = vsyncpa [#allocation6], 0 }
   0x2   :  { %14 = vsyncpa [#allocation9], 0 }
   0x3   :  { %15 = vsyncpa [#allocation4], 0  ;;  %s35_s26 = sshll.u32 %s1134_s2, 4  ;;  %s981_s27 = smov [#allocation5]   ;;  %s36_s26 = int_to_ptr.hbm [resolvable:$true] %s35_s26 }
   0x4   :  { %s37_s28 = sshll.u32 %s981_s27, 4  ;;  %s20_s8 = sshll.u32 %s1132_s0, 4  ;;  %s38_s28 = int_to_ptr.vmem [resolvable:$true] %s37_s28  ;;  %s21_s8 = int_to_ptr.hbm [resolvable:$true] %s20_s8 }
   0x5   :  { %s982_s9 = smov 128   ;;  %s983_s10 = smov 8  }
   0x6   :  { %43 = dma.hbm_to_vmem [thread:$0]  %s36_s26, 512, %s38_s28, [#allocation6], %s982_s9, %s982_s9, %s983_s10  }
   0x7   :  { %s984_s11 = smov [#allocation2]   ;;  %s48_s15 = sshll.u32 %s1135_s3, 4  ;;  %s49_s15 = int_to_ptr.hbm [resolvable:$true] %s48_s15 }
   0x8   :  { %s22_s12 = sshll.u32 %s984_s11, 4  ;;  %s63_s17 = sshll.u32 %s1137_s5, 4  ;;  %s23_s12 = int_to_ptr.vmem [resolvable:$true] %s22_s12  ;;  %s64_s17 = int_to_ptr.hbm [resolvable:$true] %s63_s17 }
   0x9   :  { %28 = dma.hbm_to_vmem [thread:$0]  %s21_s8, 1024, %s23_s12, [#allocation3], %s982_s9, %s982_s9, %s983_s10  }
   0xa   :  { %s985_s18 = smov [#allocation7]   ;;  %s986_s0 = smov [#allocation8]  }
   0xb   :  { %s50_s19 = sshll.u32 %s985_s18, 4  ;;  %s65_s20 = sshll.u32 %s986_s0, 4  ;;  %s51_s19 = int_to_ptr.vmem [resolvable:$true] %s50_s19  ;;  %s66_s20 = int_to_ptr.vmem [resolvable:$true] %s65_s20 }
   0xc   :  { %56 = dma.hbm_to_vmem [thread:$0]  %s49_s15, 512, %s51_s19, [#allocation6], %s982_s9, %s982_s9, %s983_s10  }
   0xd   :  { %71 = dma.hbm_to_vmem [thread:$0]  %s64_s17, 512, %s66_s20, [#allocation9], %s982_s9, %s982_s9, %s983_s10  }
   0xe   :  { %973 = dma.done.wait [#allocation3], 1024  }
   0xf   :  { %974 = vsyncadd [#allocation3], 4294966272 }
  0x10   :  { %975 = dma.done.wait [#allocation6], 1024  }
  0x11   :  { %976 = vsyncadd [#allocation6], 4294966272 }
  0x12   :  { %977 = dma.done.wait [#allocation9], 512  }
  0x13   :  { %978 = vsyncadd [#allocation9], 4294966784  ;;  %v102_v0 = vld [vmem:[#allocation5 + $0x18] sm:$0xff]  ;;  %v101_v1 = vld [vmem:[#allocation5 + $0x10] sm:$0xff]  ;;  %v987_v4 = vmov 0.0   ;;  %s988_s3 = smov 64  }
  0x14   :  { %119 = vmatpush.msra.mxu0 %v102_v0  ;;  %191 = vmatpush.msra.mxu1 %v102_v0  ;;  %v100_v2 = vld [vmem:[#allocation5 + $0x8] sm:$0xff]  ;;  %v99_v3 = vld [vmem:[#allocation5] sm:$0xff]  ;;  %s989_s5 = smov 32   ;;  %v990_v25 = vmov 0   ;;  %vm103_vm6 = vcmask 261120   ;;  %s991_s26 = smov [#allocation10]  }
  0x15   :  { %263 = vmatpush.msra.mxu2 %v102_v0  ;;  %335 = vmatpush.msra.mxu3 %v102_v0  ;;  %v90_v5 = vld [vmem:[#allocation2] sm:$0xff]  ;;  %v91_v37 = vld [vmem:[#allocation2 + $0x8] sm:$0xff]  ;;  %s748_s27 = sshll.u32 %s991_s26, 4  ;;  %s750_s30 = sshll.u32 %s1139_s7, 4  ;;  %s749_s27 = int_to_ptr.vmem [resolvable:$true] %s748_s27  ;;  %s751_s30 = int_to_ptr.hbm [resolvable:$true] %s750_s30 }
  0x16   :  { %120 = vmatpush.msra.mxu0 %v101_v1  ;;  %192 = vmatpush.msra.mxu1 %v101_v1  ;;  %v1052_v30 = vld [vmem:[%s1133_s1] sm:$0xff] }
  0x17   :  { %264 = vmatpush.msra.mxu2 %v101_v1  ;;  %336 = vmatpush.msra.mxu3 %v101_v1  ;;  %vm166_vm4 = vcmp.gt.s32.totalorder %v1052_v30, 0  ;;  %vm238_vm11 = vcmp.gt.s32.totalorder %v1052_v30, 1 }
  0x18   :  { %121 = vmatpush.msra.mxu0 %v100_v2  ;;  %193 = vmatpush.msra.mxu1 %v100_v2  ;;  %v167_v31 = vsel %vm166_vm4, 1, %v990_v25  ;;  %v239_v55 = vsel %vm238_vm11, 1, %v990_v25 }
  0x19   :  { %265 = vmatpush.msra.mxu2 %v100_v2  ;;  %337 = vmatpush.msra.mxu3 %v100_v2 }
  0x1a   :  { %122 = vmatpush.msra.mxu0 %v99_v3  ;;  %194 = vmatpush.msra.mxu1 %v99_v3 }
  0x1b   :  { %123 = vmatmul.f32.vlgmr.msra.gmra.mxu0 %v987_v4  ;;  %266 = vmatpush.msra.mxu2 %v99_v3  ;;  %v92_v4 = vld [vmem:[#allocation2 + $0x10] sm:$0xff] }
  0x1c   :  { %338 = vmatpush.msra.mxu3 %v99_v3  ;;  %407 = vmatpush.msrb.mxu0 %v102_v0 }
  0x1d   :  { %479 = vmatpush.msrb.mxu1 %v102_v0  ;;  %551 = vmatpush.msrb.mxu2 %v102_v0 }
  0x1e   :  { %408 = vmatpush.msrb.mxu0 %v101_v1  ;;  %623 = vmatpush.msrb.mxu3 %v102_v0 }
  0x1f   :  { %480 = vmatpush.msrb.mxu1 %v101_v1  ;;  %552 = vmatpush.msrb.mxu2 %v101_v1 }
  0x20   :  { %409 = vmatpush.msrb.mxu0 %v100_v2  ;;  %624 = vmatpush.msrb.mxu3 %v101_v1 }
  0x21   :  { %481 = vmatpush.msrb.mxu1 %v100_v2  ;;  %553 = vmatpush.msrb.mxu2 %v100_v2 }
  0x22   :  { %410 = vmatpush.msrb.mxu0 %v99_v3  ;;  %625 = vmatpush.msrb.mxu3 %v100_v2 }
  0x23   :  { %482 = vmatpush.msrb.mxu1 %v99_v3  ;;  %554 = vmatpush.msrb.mxu2 %v99_v3 }
  0x24   :  { %626 = vmatpush.msrb.mxu3 %v99_v3  ;;  %798 = vset.pattern.permute.xlu1 %v990_v25 }
  0x25   :  { %799 = vset.pattern.permute.xlu2 %v990_v25  ;;  %800 = vset.pattern.permute.xlu0 %v990_v25 }
  0x98   :  { %v124_v6 = vpop.f32.mrf.mxu0 }
  0x99   :  { %v127_v7 = vadd.f32 %v124_v6, %v90_v5 }
  0x9b   :  { %v762_v8 = vmul.f32 -1.442695, %v127_v7 }
  0x9d   :  { %803 = vpow2.f32 %v762_v8 }
  0xa3   :  { %v804_v9 = vpop.eup %803 }
  0xa4   :  { %v131_v10 = vadd.f32 1.0, %v804_v9 }
  0xa6   :  { %805 = vrcp.f32 %v131_v10  ;;  %v143_v14 = vand.u32 2147483648, %v131_v10  ;;  %v141_v16 = vand.u32 2147483647, %v131_v10  ;;  %vm137_vm1 = vweird.f32 %v131_v10 }
  0xa8   :  { %v144_v18 = vor.u32 1.1754944e-38, %v143_v14  ;;  %vm142_vm3 = vcmp.eq.f32.partialorder %v141_v16, 8.507059e+37 }
  0xac   :  { %v806_v11 = vpop.eup %805 }
  0xad   :  { %v133_v12 = vmul.f32 %v806_v11, %v131_v10  ;;  %vm138_vm0 = vweird.f32 %v806_v11 }
  0xae   :  { %vm139_vm2 = vmor %vm137_vm1, %vm138_vm0  ;;  %vm310_vm1 = vcmp.gt.s32.totalorder %v1052_v30, 2 }
  0xaf   :  { %v134_v13 = vsub.f32 1.0, %v133_v12 }
  0xb1   :  { %v135_v15 = vmul.f32 %v806_v11, %v134_v13 }
  0xb3   :  { %v136_v17 = vadd.f32 %v806_v11, %v135_v15 }
  0xb5   :  { %v140_v19 = vsel %vm139_vm2, %v806_v11, %v136_v17 }
  0xb6   :  { %v145_v20 = vsel %vm142_vm3, %v144_v18, %v140_v19 }
  0xb7   :  { %v147_v21 = vmul.f32 2.0, %v145_v20  ;;  %v149_v26 = vmul.f32 0.0, %v145_v20 }
  0xb9   :  { %v763_v22 = vadd.f32 -1.0, %v147_v21 }
  0xbb   :  { %151 = vrot.lane.b32.xlu0 %v763_v22, %s988_s3  ;;  %v311_v22 = vsel %vm310_vm1, 1, %v990_v25 }
 0x12d   :  { %v152_v23 = vpop.permute.xlu0 %151 }
 0x12e   :  { %v154_v24 = vmul.f32 %v152_v23, %v145_v20 }
 0x130   :  { %156 = vrot.lane.b32.xlu0 %v154_v24, %s989_s5 }
 0x1a2   :  { %v157_v27 = vpop.permute.xlu0 %156 }
 0x1a3   :  { %v159_v28 = vadd.f32 %v157_v27, %v149_v26 }
 0x1a5   :  { %807 = vtanh.f32 %v159_v28 }
 0x1ab   :  { %v808_v29 = vpop.eup %807 }
 0x1ac   :  { %162 = vrot.lane.b32.xlu1 %v808_v29, %s988_s3 }
 0x1b4   :  { %169 = vperm.xlu1 %798, %v167_v31  }
 0x21e   :  { %v163_v32 = vpop.permute.xlu1 %162 }
 0x21f   :  { %v165_v33 = vmul.f32 %v163_v32, %v145_v20 }
 0x226   :  { %v170_v34 = vpop.permute.xlu1 %169 }
 0x227   :  { %vm171_vm5 = vcmp.eq.s32.totalorder %v170_v34, 1 }
 0x228   :  { %v172_v35 = vsel %vm171_vm5, %v165_v33, 0.0  ;;  %v173_v58 = vsel %vm171_vm5, %v159_v28, 0.0 }
 0x229   :  { %175 = vrot.lane.b32.xlu2 %v172_v35, %s989_s5 }
 0x283   :  { %v176_v36 = vpop.permute.xlu2 %175 }
 0x284   :  { %764 = vmatmul.msk.f32.vlgmr.msra.gmra.mxu1 %vm103_vm6, %v176_v36 }
 0x301   :  { %v196_v38 = vpop.f32.mrf.mxu1 }
 0x302   :  { %v199_v39 = vadd.f32 %v196_v38, %v91_v37  ;;  %v93_v37 = vld [vmem:[#allocation2 + $0x18] sm:$0xff] }
 0x304   :  { %v765_v40 = vmul.f32 -1.442695, %v199_v39 }
 0x306   :  { %809 = vpow2.f32 %v765_v40 }
 0x30c   :  { %v810_v41 = vpop.eup %809 }
 0x30d   :  { %v203_v42 = vadd.f32 1.0, %v810_v41 }
 0x30f   :  { %811 = vrcp.f32 %v203_v42  ;;  %v215_v46 = vand.u32 2147483648, %v203_v42  ;;  %v213_v48 = vand.u32 2147483647, %v203_v42  ;;  %vm209_vm8 = vweird.f32 %v203_v42 }
 0x311   :  { %v216_v50 = vor.u32 1.1754944e-38, %v215_v46  ;;  %vm214_vm10 = vcmp.eq.f32.partialorder %v213_v48, 8.507059e+37 }
 0x315   :  { %v812_v43 = vpop.eup %811 }
 0x316   :  { %v205_v44 = vmul.f32 %v812_v43, %v203_v42  ;;  %vm210_vm7 = vweird.f32 %v812_v43 }
 0x317   :  { %vm211_vm9 = vmor %vm209_vm8, %vm210_vm7  ;;  %vm382_vm8 = vcmp.gt.s32.totalorder %v1052_v30, 3 }
 0x318   :  { %v206_v45 = vsub.f32 1.0, %v205_v44 }
 0x31a   :  { %v207_v47 = vmul.f32 %v812_v43, %v206_v45 }
 0x31c   :  { %v208_v49 = vadd.f32 %v812_v43, %v207_v47 }
 0x31e   :  { %v212_v51 = vsel %vm211_vm9, %v812_v43, %v208_v49  ;;  %vm454_vm9 = vcmp.gt.s32.totalorder %v1052_v30, 4 }
 0x31f   :  { %v217_v52 = vsel %vm214_vm10, %v216_v50, %v212_v51 }
 0x320   :  { %v219_v53 = vmul.f32 2.0, %v217_v52  ;;  %v221_v59 = vmul.f32 %v217_v52, %v173_v58 }
 0x322   :  { %v766_v54 = vadd.f32 -1.0, %v219_v53 }
 0x324   :  { %223 = vrot.lane.b32.xlu2 %v766_v54, %s988_s3 }
 0x32c   :  { %241 = vperm.xlu2 %799, %v239_v55   ;;  %v383_v55 = vsel %vm382_vm8, 1, %v990_v25 }
 0x37e   :  { %v224_v56 = vpop.permute.xlu2 %223 }
 0x37f   :  { %v226_v57 = vmul.f32 %v224_v56, %v217_v52  ;;  %v455_v56 = vsel %vm454_vm9, 1, %v990_v25 }
 0x381   :  { %228 = vrot.lane.b32.xlu0 %v226_v57, %s989_s5 }
 0x386   :  { %v242_v63 = vpop.permute.xlu2 %241 }
 0x387   :  { %vm243_vm12 = vcmp.eq.s32.totalorder %v242_v63, 1 }
 0x3f3   :  { %v229_v60 = vpop.permute.xlu0 %228 }
 0x3f4   :  { %v231_v61 = vadd.f32 %v229_v60, %v221_v59 }
 0x3f6   :  { %813 = vtanh.f32 %v231_v61  ;;  %v245_v26 = vsel %vm243_vm12, %v231_v61, %v173_v58 }
 0x3fc   :  { %v814_v62 = vpop.eup %813 }
 0x3fd   :  { %234 = vrot.lane.b32.xlu1 %v814_v62, %s988_s3 }
 0x46f   :  { %v235_v0 = vpop.permute.xlu1 %234 }
 0x470   :  { %v237_v1 = vmul.f32 %v235_v0, %v217_v52 }
 0x472   :  { %v244_v2 = vsel %vm243_vm12, %v237_v1, %v172_v35 }
 0x473   :  { %247 = vrot.lane.b32.xlu0 %v244_v2, %s989_s5 }
 0x4e5   :  { %v248_v3 = vpop.permute.xlu0 %247 }
 0x4e6   :  { %767 = vmatmul.msk.f32.vlgmr.msra.gmra.mxu2 %vm103_vm6, %v248_v3 }
 0x569   :  { %v268_v5 = vpop.f32.mrf.mxu2 }
 0x56a   :  { %v271_v6 = vadd.f32 %v268_v5, %v92_v4  ;;  %v94_v5 = vld [vmem:[#allocation2 + $0x20] sm:$0xff] }
 0x56c   :  { %v768_v7 = vmul.f32 -1.442695, %v271_v6 }
 0x56e   :  { %815 = vpow2.f32 %v768_v7 }
 0x574   :  { %v816_v8 = vpop.eup %815 }
 0x575   :  { %v275_v9 = vadd.f32 1.0, %v816_v8 }
 0x577   :  { %817 = vrcp.f32 %v275_v9  ;;  %v287_v13 = vand.u32 2147483648, %v275_v9  ;;  %v285_v15 = vand.u32 2147483647, %v275_v9  ;;  %vm281_vm14 = vweird.f32 %v275_v9 }
 0x579   :  { %v288_v17 = vor.u32 1.1754944e-38, %v287_v13  ;;  %vm286_vm0 = vcmp.eq.f32.partialorder %v285_v15, 8.507059e+37 }
 0x57d   :  { %v818_v10 = vpop.eup %817 }
 0x57e   :  { %v277_v11 = vmul.f32 %v818_v10, %v275_v9  ;;  %vm282_vm13 = vweird.f32 %v818_v10 }
 0x57f   :  { %vm283_vm15 = vmor %vm281_vm14, %vm282_vm13 }
 0x580   :  { %v278_v12 = vsub.f32 1.0, %v277_v11 }
 0x582   :  { %v279_v14 = vmul.f32 %v818_v10, %v278_v12 }
 0x584   :  { %v280_v16 = vadd.f32 %v818_v10, %v279_v14 }
 0x586   :  { %v284_v18 = vsel %vm283_vm15, %v818_v10, %v280_v16 }
 0x587   :  { %v289_v19 = vsel %vm286_vm0, %v288_v17, %v284_v18 }
 0x588   :  { %v291_v20 = vmul.f32 2.0, %v289_v19  ;;  %v293_v27 = vmul.f32 %v289_v19, %v245_v26 }
 0x58a   :  { %v769_v21 = vadd.f32 -1.0, %v291_v20 }
 0x58c   :  { %295 = vrot.lane.b32.xlu1 %v769_v21, %s988_s3 }
 0x594   :  { %313 = vperm.xlu1 %798, %v311_v22  }
 0x5fe   :  { %v296_v23 = vpop.permute.xlu1 %295 }
 0x5ff   :  { %v298_v24 = vmul.f32 %v296_v23, %v289_v19 }
 0x601   :  { %300 = vrot.lane.b32.xlu2 %v298_v24, %s989_s5 }
 0x606   :  { %v314_v32 = vpop.permute.xlu1 %313 }
 0x607   :  { %vm315_vm2 = vcmp.eq.s32.totalorder %v314_v32, 1 }
 0x65b   :  { %v301_v28 = vpop.permute.xlu2 %300 }
 0x65c   :  { %v303_v29 = vadd.f32 %v301_v28, %v293_v27 }
 0x65e   :  { %819 = vtanh.f32 %v303_v29  ;;  %v317_v59 = vsel %vm315_vm2, %v303_v29, %v245_v26 }
 0x664   :  { %v820_v31 = vpop.eup %819 }
 0x665   :  { %306 = vrot.lane.b32.xlu0 %v820_v31, %s988_s3 }
 0x6d7   :  { %v307_v33 = vpop.permute.xlu0 %306 }
 0x6d8   :  { %v309_v34 = vmul.f32 %v307_v33, %v289_v19 }
 0x6da   :  { %v316_v35 = vsel %vm315_vm2, %v309_v34, %v244_v2 }
 0x6db   :  { %319 = vrot.lane.b32.xlu2 %v316_v35, %s989_s5 }
 0x735   :  { %v320_v36 = vpop.permute.xlu2 %319 }
 0x736   :  { %770 = vmatmul.msk.f32.vlgmr.msra.gmra.mxu3 %vm103_vm6, %v320_v36 }
 0x7b9   :  { %v340_v38 = vpop.f32.mrf.mxu3 }
 0x7ba   :  { %v343_v39 = vadd.f32 %v340_v38, %v93_v37  ;;  %v95_v37 = vld [vmem:[#allocation2 + $0x28] sm:$0xff] }
 0x7bc   :  { %v771_v40 = vmul.f32 -1.442695, %v343_v39 }
 0x7be   :  { %821 = vpow2.f32 %v771_v40 }
 0x7c4   :  { %v822_v41 = vpop.eup %821 }
 0x7c5   :  { %v347_v42 = vadd.f32 1.0, %v822_v41 }
 0x7c7   :  { %823 = vrcp.f32 %v347_v42  ;;  %v359_v46 = vand.u32 2147483648, %v347_v42  ;;  %v357_v48 = vand.u32 2147483647, %v347_v42  ;;  %vm353_vm4 = vweird.f32 %v347_v42 }
 0x7c9   :  { %v360_v50 = vor.u32 1.1754944e-38, %v359_v46  ;;  %vm358_vm7 = vcmp.eq.f32.partialorder %v357_v48, 8.507059e+37 }
 0x7cd   :  { %v824_v43 = vpop.eup %823 }
 0x7ce   :  { %v349_v44 = vmul.f32 %v824_v43, %v347_v42  ;;  %vm354_vm3 = vweird.f32 %v824_v43 }
 0x7cf   :  { %vm355_vm5 = vmor %vm353_vm4, %vm354_vm3  ;;  %vm526_vm4 = vcmp.gt.s32.totalorder %v1052_v30, 5 }
 0x7d0   :  { %v350_v45 = vsub.f32 1.0, %v349_v44 }
 0x7d2   :  { %v351_v47 = vmul.f32 %v824_v43, %v350_v45 }
 0x7d4   :  { %v352_v49 = vadd.f32 %v824_v43, %v351_v47 }
 0x7d6   :  { %v356_v51 = vsel %vm355_vm5, %v824_v43, %v352_v49 }
 0x7d7   :  { %v361_v52 = vsel %vm358_vm7, %v360_v50, %v356_v51 }
 0x7d8   :  { %v363_v53 = vmul.f32 2.0, %v361_v52  ;;  %v365_v60 = vmul.f32 %v361_v52, %v317_v59 }
 0x7da   :  { %v772_v54 = vadd.f32 -1.0, %v363_v53 }
 0x7dc   :  { %367 = vrot.lane.b32.xlu0 %v772_v54, %s988_s3 }
 0x7e4   :  { %385 = vperm.xlu0 %800, %v383_v55   ;;  %v527_v55 = vsel %vm526_vm4, 1, %v990_v25 }
 0x7ec   :  { %457 = vperm.xlu0 %800, %v455_v56  }
 0x84e   :  { %v368_v57 = vpop.permute.xlu0 %367 }
 0x84f   :  { %v370_v58 = vmul.f32 %v368_v57, %v361_v52 }
 0x851   :  { %372 = vrot.lane.b32.xlu1 %v370_v58, %s989_s5 }
 0x856   :  { %v386_v0 = vpop.permute.xlu0 %385 }
 0x857   :  { %vm387_vm10 = vcmp.eq.s32.totalorder %v386_v0, 1 }
 0x85e   :  { %v458_v32 = vpop.permute.xlu0 %457 }
 0x85f   :  { %vm459_vm15 = vcmp.eq.s32.totalorder %v458_v32, 1 }
 0x8c3   :  { %v373_v61 = vpop.permute.xlu1 %372 }
 0x8c4   :  { %v375_v62 = vadd.f32 %v373_v61, %v365_v60 }
 0x8c6   :  { %825 = vtanh.f32 %v375_v62  ;;  %v389_v26 = vsel %vm387_vm10, %v375_v62, %v317_v59 }
 0x8cc   :  { %v826_v63 = vpop.eup %825 }
 0x8cd   :  { %378 = vrot.lane.b32.xlu2 %v826_v63, %s988_s3 }
 0x927   :  { %v379_v1 = vpop.permute.xlu2 %378 }
 0x928   :  { %v381_v2 = vmul.f32 %v379_v1, %v361_v52 }
 0x92a   :  { %v388_v3 = vsel %vm387_vm10, %v381_v2, %v316_v35 }
 0x92b   :  { %391 = vrot.lane.b32.xlu1 %v388_v3, %s989_s5 }
 0x99d   :  { %v392_v4 = vpop.permute.xlu1 %391 }
 0x99e   :  { %773 = vmatmul.msk.f32.vlgmr.msrb.gmra.mxu0 %vm103_vm6, %v392_v4  ;;  %v96_v4 = vld [vmem:[#allocation2 + $0x30] sm:$0xff] }
 0xa1b   :  { %v412_v6 = vpop.f32.mrf.mxu0 }
 0xa1c   :  { %v415_v7 = vadd.f32 %v412_v6, %v94_v5 }
 0xa1e   :  { %v774_v8 = vmul.f32 -1.442695, %v415_v7 }
 0xa20   :  { %827 = vpow2.f32 %v774_v8 }
 0xa26   :  { %v828_v9 = vpop.eup %827 }
 0xa27   :  { %v419_v10 = vadd.f32 1.0, %v828_v9 }
 0xa29   :  { %829 = vrcp.f32 %v419_v10  ;;  %v431_v14 = vand.u32 2147483648, %v419_v10  ;;  %v429_v16 = vand.u32 2147483647, %v419_v10  ;;  %vm425_vm12 = vweird.f32 %v419_v10 }
 0xa2b   :  { %v432_v18 = vor.u32 1.1754944e-38, %v431_v14  ;;  %vm430_vm14 = vcmp.eq.f32.partialorder %v429_v16, 8.507059e+37 }
 0xa2f   :  { %v830_v11 = vpop.eup %829 }
 0xa30   :  { %v421_v12 = vmul.f32 %v830_v11, %v419_v10  ;;  %vm426_vm11 = vweird.f32 %v830_v11 }
 0xa31   :  { %vm427_vm13 = vmor %vm425_vm12, %vm426_vm11  ;;  %vm598_vm11 = vcmp.gt.s32.totalorder %v1052_v30, 6 }
 0xa32   :  { %v422_v13 = vsub.f32 1.0, %v421_v12 }
 0xa34   :  { %v423_v15 = vmul.f32 %v830_v11, %v422_v13 }
 0xa36   :  { %v424_v17 = vadd.f32 %v830_v11, %v423_v15 }
 0xa38   :  { %v428_v19 = vsel %vm427_vm13, %v830_v11, %v424_v17 }
 0xa39   :  { %v433_v20 = vsel %vm430_vm14, %v432_v18, %v428_v19 }
 0xa3a   :  { %v435_v21 = vmul.f32 2.0, %v433_v20  ;;  %v437_v27 = vmul.f32 %v433_v20, %v389_v26 }
 0xa3c   :  { %v775_v22 = vadd.f32 -1.0, %v435_v21 }
 0xa3e   :  { %439 = vrot.lane.b32.xlu2 %v775_v22, %s988_s3  ;;  %v599_v22 = vsel %vm598_vm11, 1, %v990_v25 }
 0xa98   :  { %v440_v23 = vpop.permute.xlu2 %439 }
 0xa99   :  { %v442_v24 = vmul.f32 %v440_v23, %v433_v20 }
 0xa9b   :  { %444 = vrot.lane.b32.xlu1 %v442_v24, %s989_s5 }
 0xb0d   :  { %v445_v28 = vpop.permute.xlu1 %444 }
 0xb0e   :  { %v447_v29 = vadd.f32 %v445_v28, %v437_v27 }
 0xb10   :  { %831 = vtanh.f32 %v447_v29  ;;  %v461_v58 = vsel %vm459_vm15, %v447_v29, %v389_v26 }
 0xb16   :  { %v832_v31 = vpop.eup %831 }
 0xb17   :  { %450 = vrot.lane.b32.xlu2 %v832_v31, %s988_s3 }
 0xb71   :  { %v451_v33 = vpop.permute.xlu2 %450 }
 0xb72   :  { %v453_v34 = vmul.f32 %v451_v33, %v433_v20 }
 0xb74   :  { %v460_v35 = vsel %vm459_vm15, %v453_v34, %v388_v3 }
 0xb75   :  { %463 = vrot.lane.b32.xlu1 %v460_v35, %s989_s5 }
 0xbe7   :  { %v464_v36 = vpop.permute.xlu1 %463 }
 0xbe8   :  { %776 = vmatmul.msk.f32.vlgmr.msrb.gmra.mxu1 %vm103_vm6, %v464_v36 }
 0xc65   :  { %v484_v38 = vpop.f32.mrf.mxu1 }
 0xc66   :  { %v487_v39 = vadd.f32 %v484_v38, %v95_v37  ;;  %v97_v37 = vld [vmem:[#allocation2 + $0x38] sm:$0xff] }
 0xc68   :  { %v777_v40 = vmul.f32 -1.442695, %v487_v39 }
 0xc6a   :  { %833 = vpow2.f32 %v777_v40 }
 0xc70   :  { %v834_v41 = vpop.eup %833 }
 0xc71   :  { %v491_v42 = vadd.f32 1.0, %v834_v41 }
 0xc73   :  { %835 = vrcp.f32 %v491_v42  ;;  %v503_v46 = vand.u32 2147483648, %v491_v42  ;;  %v501_v48 = vand.u32 2147483647, %v491_v42  ;;  %vm497_vm1 = vweird.f32 %v491_v42 }
 0xc75   :  { %v504_v50 = vor.u32 1.1754944e-38, %v503_v46  ;;  %vm502_vm3 = vcmp.eq.f32.partialorder %v501_v48, 8.507059e+37 }
 0xc79   :  { %v836_v43 = vpop.eup %835 }
 0xc7a   :  { %v493_v44 = vmul.f32 %v836_v43, %v491_v42  ;;  %vm498_vm0 = vweird.f32 %v836_v43 }
 0xc7b   :  { %vm499_vm2 = vmor %vm497_vm1, %vm498_vm0  ;;  %vm670_vm1 = vcmp.gt.s32.totalorder %v1052_v30, 7  ;;  %v678_v30 = vld [vmem:[#allocation7 + $0x8] sm:$0xff] }
 0xc7c   :  { %v494_v45 = vsub.f32 1.0, %v493_v44 }
 0xc7e   :  { %v495_v47 = vmul.f32 %v836_v43, %v494_v45 }
 0xc80   :  { %v496_v49 = vadd.f32 %v836_v43, %v495_v47 }
 0xc82   :  { %v500_v51 = vsel %vm499_vm2, %v836_v43, %v496_v49 }
 0xc83   :  { %v505_v52 = vsel %vm502_vm3, %v504_v50, %v500_v51 }
 0xc84   :  { %v507_v53 = vmul.f32 2.0, %v505_v52  ;;  %v509_v59 = vmul.f32 %v505_v52, %v461_v58 }
 0xc86   :  { %v778_v54 = vadd.f32 -1.0, %v507_v53 }
 0xc88   :  { %511 = vrot.lane.b32.xlu2 %v778_v54, %s988_s3 }
 0xc90   :  { %529 = vperm.xlu2 %799, %v527_v55   ;;  %v671_v55 = vsel %vm670_vm1, 1, %v990_v25  ;;  %v677_v25 = vld [vmem:[#allocation7] sm:$0xff] }
 0xce2   :  { %v512_v56 = vpop.permute.xlu2 %511 }
 0xce3   :  { %v514_v57 = vmul.f32 %v512_v56, %v505_v52 }
 0xce5   :  { %516 = vrot.lane.b32.xlu0 %v514_v57, %s989_s5 }
 0xcea   :  { %v530_v63 = vpop.permute.xlu2 %529 }
 0xceb   :  { %vm531_vm5 = vcmp.eq.s32.totalorder %v530_v63, 1  ;;  %v680_v63 = vld [vmem:[#allocation7 + $0x18] sm:$0xff] }
 0xcec   :  { %702 = vmatpush.msra.mxu0 %v680_v63 }
 0xd57   :  { %v517_v60 = vpop.permute.xlu0 %516 }
 0xd58   :  { %v519_v61 = vadd.f32 %v517_v60, %v509_v59 }
 0xd5a   :  { %837 = vtanh.f32 %v519_v61  ;;  %v533_v26 = vsel %vm531_vm5, %v519_v61, %v461_v58 }
 0xd60   :  { %v838_v62 = vpop.eup %837 }
 0xd61   :  { %522 = vrot.lane.b32.xlu1 %v838_v62, %s988_s3 }
 0xdd3   :  { %v523_v0 = vpop.permute.xlu1 %522 }
 0xdd4   :  { %v525_v1 = vmul.f32 %v523_v0, %v505_v52  ;;  %v679_v0 = vld [vmem:[#allocation7 + $0x10] sm:$0xff] }
 0xdd5   :  { %703 = vmatpush.msra.mxu0 %v679_v0 }
 0xdd6   :  { %v532_v2 = vsel %vm531_vm5, %v525_v1, %v460_v35 }
 0xdd7   :  { %535 = vrot.lane.b32.xlu0 %v532_v2, %s989_s5  ;;  %704 = vmatpush.msra.mxu0 %v678_v30 }
 0xdd9   :  { %705 = vmatpush.msra.mxu0 %v677_v25 }
 0xe49   :  { %v536_v3 = vpop.permute.xlu0 %535 }
 0xe4a   :  { %779 = vmatmul.msk.f32.vlgmr.msrb.gmra.mxu2 %vm103_vm6, %v536_v3 }
 0xecd   :  { %v556_v5 = vpop.f32.mrf.mxu2 }
 0xece   :  { %v559_v6 = vadd.f32 %v556_v5, %v96_v4 }
 0xed0   :  { %v780_v7 = vmul.f32 -1.442695, %v559_v6  ;;  %v714_v6 = vld [vmem:[#allocation8 + $0x18] sm:$0xff] }
 0xed1   :  { %734 = vmatpush.msra.mxu1 %v714_v6 }
 0xed2   :  { %839 = vpow2.f32 %v780_v7  ;;  %v713_v7 = vld [vmem:[#allocation8 + $0x10] sm:$0xff] }
 0xed3   :  { %735 = vmatpush.msra.mxu1 %v713_v7 }
 0xed8   :  { %v840_v8 = vpop.eup %839 }
 0xed9   :  { %v563_v9 = vadd.f32 1.0, %v840_v8  ;;  %v712_v8 = vld [vmem:[#allocation8 + $0x8] sm:$0xff] }
 0xeda   :  { %736 = vmatpush.msra.mxu1 %v712_v8 }
 0xedb   :  { %841 = vrcp.f32 %v563_v9  ;;  %v575_v13 = vand.u32 2147483648, %v563_v9  ;;  %v573_v15 = vand.u32 2147483647, %v563_v9  ;;  %vm569_vm8 = vweird.f32 %v563_v9 }
 0xedd   :  { %v576_v17 = vor.u32 1.1754944e-38, %v575_v13  ;;  %vm574_vm10 = vcmp.eq.f32.partialorder %v573_v15, 8.507059e+37 }
 0xee1   :  { %v842_v10 = vpop.eup %841 }
 0xee2   :  { %v565_v11 = vmul.f32 %v842_v10, %v563_v9  ;;  %vm570_vm7 = vweird.f32 %v842_v10  ;;  %v711_v9 = vld [vmem:[#allocation8] sm:$0xff] }
 0xee3   :  { %vm571_vm9 = vmor %vm569_vm8, %vm570_vm7  ;;  %737 = vmatpush.msra.mxu1 %v711_v9 }
 0xee4   :  { %v566_v12 = vsub.f32 1.0, %v565_v11 }
 0xee6   :  { %v567_v14 = vmul.f32 %v842_v10, %v566_v12 }
 0xee8   :  { %v568_v16 = vadd.f32 %v842_v10, %v567_v14  ;;  %v802_v14 = vld [vmem:[%s1138_s6] ss:$0 sm:$0xff] }
 0xeea   :  { %v572_v18 = vsel %vm571_vm9, %v842_v10, %v568_v16  ;;  %v801_v10 = vld [vmem:[%s1136_s4] ss:$0 sm:$0xff] }
 0xeeb   :  { %v577_v19 = vsel %vm574_vm10, %v576_v17, %v572_v18 }
 0xeec   :  { %v579_v20 = vmul.f32 2.0, %v577_v19  ;;  %v581_v27 = vmul.f32 %v577_v19, %v533_v26 }
 0xeee   :  { %v781_v21 = vadd.f32 -1.0, %v579_v20 }
 0xef0   :  { %583 = vrot.lane.b32.xlu1 %v781_v21, %s988_s3 }
 0xef8   :  { %601 = vperm.xlu1 %798, %v599_v22  }
 0xf62   :  { %v584_v23 = vpop.permute.xlu1 %583 }
 0xf63   :  { %v586_v24 = vmul.f32 %v584_v23, %v577_v19 }
 0xf65   :  { %588 = vrot.lane.b32.xlu2 %v586_v24, %s989_s5 }
 0xf6a   :  { %v602_v32 = vpop.permute.xlu1 %601 }
 0xf6b   :  { %vm603_vm12 = vcmp.eq.s32.totalorder %v602_v32, 1 }
 0xfbf   :  { %v589_v28 = vpop.permute.xlu2 %588 }
 0xfc0   :  { %v591_v29 = vadd.f32 %v589_v28, %v581_v27 }
 0xfc2   :  { %843 = vtanh.f32 %v591_v29  ;;  %v605_v58 = vsel %vm603_vm12, %v591_v29, %v533_v26 }
 0xfc8   :  { %v844_v31 = vpop.eup %843 }
 0xfc9   :  { %594 = vrot.lane.b32.xlu0 %v844_v31, %s988_s3 }
0x103b   :  { %v595_v33 = vpop.permute.xlu0 %594 }
0x103c   :  { %v597_v34 = vmul.f32 %v595_v33, %v577_v19 }
0x103e   :  { %v604_v35 = vsel %vm603_vm12, %v597_v34, %v532_v2 }
0x103f   :  { %607 = vrot.lane.b32.xlu2 %v604_v35, %s989_s5 }
0x1099   :  { %v608_v36 = vpop.permute.xlu2 %607 }
0x109a   :  { %782 = vmatmul.msk.f32.vlgmr.msrb.gmra.mxu3 %vm103_vm6, %v608_v36 }
0x111d   :  { %v628_v38 = vpop.f32.mrf.mxu3 }
0x111e   :  { %v631_v39 = vadd.f32 %v628_v38, %v97_v37 }
0x1120   :  { %v783_v40 = vmul.f32 -1.442695, %v631_v39 }
0x1122   :  { %845 = vpow2.f32 %v783_v40 }
0x1128   :  { %v846_v41 = vpop.eup %845 }
0x1129   :  { %v635_v42 = vadd.f32 1.0, %v846_v41 }
0x112b   :  { %847 = vrcp.f32 %v635_v42  ;;  %v647_v46 = vand.u32 2147483648, %v635_v42  ;;  %v645_v48 = vand.u32 2147483647, %v635_v42  ;;  %vm641_vm14 = vweird.f32 %v635_v42 }
0x112d   :  { %v648_v50 = vor.u32 1.1754944e-38, %v647_v46  ;;  %vm646_vm0 = vcmp.eq.f32.partialorder %v645_v48, 8.507059e+37 }
0x1131   :  { %v848_v43 = vpop.eup %847 }
0x1132   :  { %v637_v44 = vmul.f32 %v848_v43, %v635_v42  ;;  %vm642_vm13 = vweird.f32 %v848_v43 }
0x1133   :  { %vm643_vm15 = vmor %vm641_vm14, %vm642_vm13 }
0x1134   :  { %v638_v45 = vsub.f32 1.0, %v637_v44 }
0x1136   :  { %v639_v47 = vmul.f32 %v848_v43, %v638_v45 }
0x1138   :  { %v640_v49 = vadd.f32 %v848_v43, %v639_v47 }
0x113a   :  { %v644_v51 = vsel %vm643_vm15, %v848_v43, %v640_v49 }
0x113b   :  { %v649_v52 = vsel %vm646_vm0, %v648_v50, %v644_v51 }
0x113c   :  { %v651_v53 = vmul.f32 2.0, %v649_v52  ;;  %v653_v59 = vmul.f32 %v649_v52, %v605_v58 }
0x113e   :  { %v784_v54 = vadd.f32 -1.0, %v651_v53 }
0x1140   :  { %655 = vrot.lane.b32.xlu0 %v784_v54, %s988_s3 }
0x1148   :  { %673 = vperm.xlu0 %800, %v671_v55  }
0x11b2   :  { %v656_v56 = vpop.permute.xlu0 %655 }
0x11b3   :  { %v658_v57 = vmul.f32 %v656_v56, %v649_v52 }
0x11b5   :  { %660 = vrot.lane.b32.xlu1 %v658_v57, %s989_s5 }
0x11ba   :  { %v674_v1 = vpop.permute.xlu0 %673 }
0x11bb   :  { %vm675_vm2 = vcmp.eq.s32.totalorder %v674_v1, 1 }
0x1227   :  { %v661_v60 = vpop.permute.xlu1 %660 }
0x1228   :  { %v663_v61 = vadd.f32 %v661_v60, %v653_v59 }
0x122a   :  { %849 = vtanh.f32 %v663_v61 }
0x1230   :  { %v850_v62 = vpop.eup %849 }
0x1231   :  { %666 = vrot.lane.b32.xlu2 %v850_v62, %s988_s3 }
0x128b   :  { %v667_v2 = vpop.permute.xlu2 %666 }
0x128c   :  { %v669_v3 = vmul.f32 %v667_v2, %v649_v52 }
0x128e   :  { %v676_v4 = vsel %vm675_vm2, %v669_v3, %v604_v35 }
0x128f   :  { %686 = vrot.lane.b32.xlu1 %v676_v4, %s989_s5 }
0x1301   :  { %v687_v5 = vpop.permute.xlu1 %686 }
0x1302   :  { %785 = vmatmul.msk.f32.vlgmr.msra.gmra.mxu0 %vm103_vm6, %v687_v5 }
0x137f   :  { %v707_v11 = vpop.f32.mrf.mxu0 }
0x1380   :  { %v708_v12 = vadd.f32 %v801_v10, %v707_v11 }
0x1382   :  { %851 = vtanh.f32 %v708_v12 }
0x1388   :  { %v852_v13 = vpop.eup %851 }
0x1389   :  { %786 = vmatmul.msk.f32.vlgmr.msra.gmra.mxu1 %vm103_vm6, %v852_v13 }
0x1406   :  { %v739_v15 = vpop.f32.mrf.mxu1 }
0x1407   :  { %v740_v16 = vadd.f32 %v802_v14, %v739_v15 }
0x1409   :  { %742 = vst [vmem:[#allocation10] sm:$0xff] %v740_v16 }
0x140a   :  { %753 = dma.vmem_to_hbm [thread:$0]  %s749_s27, 128, %s751_s30, [#allocation4]  }
0x140b   :  { %979 = dma.done.wait [#allocation4], 128  }
0x140c   :  { %980 = vsyncadd [#allocation4], 4294967168 }
0x140d   :  { %758 = vsyncpa [#allocation3], 1 }
0x140e   :  { %759 = vsyncpa [#allocation6], 1 }
0x140f   :  { %760 = vsyncpa [#allocation9], 1 }
0x1410   :  { %761 = vsyncpa [#allocation4], 1 }

</bundles_post_ra>
